<compile_context>
chip_gen: v6e
topology: v6e:2x2x1
jax: 0.10.0
libtpu: 0.0.40
codegen_flags: <defaults>
</compile_context>

<pallas_src>
import jax
import jax.numpy as jnp
from jax.experimental import pallas as pl
from jax.experimental.pallas import tpu as pltpu


def _message_linear_kernel(e_ref, h_ref, w_ref, b_ref, out_ref):
    # e_ref:  (E, Nt)    edge features, node axis on lanes
    # h_ref:  (F, Nt)    node features, node axis on lanes
    # w_ref:  (M, E+F)   concatenated [W_edge | W_node] (torch out x in layout)
    # b_ref:  (M, 1)     pre-summed bias (b_edge + b_node)
    # out_ref:(M, Nt)
    x = jnp.concatenate([e_ref[...], h_ref[...]], axis=0)        # (E+F, Nt)
    acc = jnp.dot(w_ref[...], x, preferred_element_type=jnp.float32)
    out_ref[...] = (acc + b_ref[...]).astype(out_ref.dtype)


def _choose_tiling(B, N):
    """Pick (n_tile, n_blocks) for the node axis.

    Prefers big lane-dense tiles (mem-bound kernel: amortize the ~0.35us
    per-step overhead), caps at 32768 so the double-buffered footprint stays
    well inside every generation's scoped VMEM, and guarantees >=2 grid
    points when possible so v7x's two TensorCores both get work.
    """
    if N <= 128:
        # Full-extent block; a (..., N) block equal to the array dim is legal
        # even when N % 128 != 0 (stores are masked but N is tiny anyway).
        return N, 1

    n_tile = 128
    for cand in (32768, 16384, 8192, 4096, 2048, 1024, 512, 256, 128):
        if N >= cand:
            n_tile = cand
            break
    n_blocks = -(-N // n_tile)

    # Keep >=2 grid points total when B == 1 (megacore sharding on v7x).
    while B * n_blocks < 2 and n_tile > 128:
        n_tile //= 2
        n_blocks = -(-N // n_tile)
    return n_tile, n_blocks


def message_function_linear(h_v, h_w, e_vw, W_edge, b_edge, W_node, b_node,
                            out_dtype=jnp.float32):
    """Pallas implementation of MessageFunction.m_linear.

    h_v is unused by the 'linear' message definition (kept for API parity).
    W_edge: (message_size, edge_feature_size)  -- torch.nn.Linear weight layout
    W_node: (message_size, node_feature_size)
    b_edge, b_node: (message_size,)
    Returns message of shape (B, message_size, N) in out_dtype (default f32).
    """
    del h_v  # not used by the 'linear' message definition
    B, E, N = e_vw.shape
    F = h_w.shape[1]
    M = W_edge.shape[0]

    n_tile, n_blocks = _choose_tiling(B, N)

    e_vw = e_vw.astype(jnp.float32)
    h_w = h_w.astype(jnp.float32)
    # Fused weight [W_edge | W_node]: one MXU contraction instead of two.
    w_cat = jnp.concatenate(
        [W_edge.astype(jnp.float32), W_node.astype(jnp.float32)], axis=1)   # (M, E+F)
    b = (b_edge + b_node).reshape(M, 1).astype(jnp.float32)                 # (M, 1)

    cost = pl.CostEstimate(
        flops=2 * B * N * (E + F) * M,
        transcendentals=0,
        bytes_accessed=4 * (B * N * (E + F + M)) + 4 * M * (E + F + 1),
    )

    out = pl.pallas_call(
        _message_linear_kernel,
        out_shape=jax.ShapeDtypeStruct((B, M, N), out_dtype),
        grid=(B, n_blocks),
        in_specs=[
            # activations: batch dim squeezed, node axis on lanes
            pl.BlockSpec((None, E, n_tile), lambda b, n: (b, 0, n)),
            pl.BlockSpec((None, F, n_tile), lambda b, n: (b, 0, n)),
            # tiny fused weight / bias: resident full blocks (constant index_map)
            pl.BlockSpec((M, E + F), lambda b, n: (0, 0)),
            pl.BlockSpec((M, 1), lambda b, n: (0, 0)),
        ],
        out_specs=pl.BlockSpec((None, M, n_tile), lambda b, n: (b, 0, n)),
        compiler_params=pltpu.CompilerParams(
            dimension_semantics=("parallel", "parallel"),
            vmem_limit_bytes=32 * 1024 * 1024,
        ),
        cost_estimate=cost,
    )(e_vw, h_w, w_cat, b)

    return out


if __name__ == "__main__":
    # Small shapes consistent with the module's 'linear' message:
    #   args = {'edge_feature_size': 8, 'node_feature_size': 4, 'message_size': 32}
    B = 2               # batch of edges
    N = 16              # number of neighbour nodes (last axis of e_vw / h_w)
    EDGE_FEAT = 8
    NODE_FEAT = 4
    MSG = 32

    key = jax.random.PRNGKey(0)
    k1, k2, k3, k4, k5, k6, k7 = jax.random.split(key, 7)

    # Deterministic "parameter" init mimicking torch.nn.Linear uniform(-1/sqrt(in), 1/sqrt(in))
    lim_e = 1.0 / jnp.sqrt(EDGE_FEAT)
    lim_n = 1.0 / jnp.sqrt(NODE_FEAT)
    W_edge = jax.random.uniform(k1, (MSG, EDGE_FEAT), minval=-lim_e, maxval=lim_e, dtype=jnp.float32)
    b_edge = jax.random.uniform(k2, (MSG,), minval=-lim_e, maxval=lim_e, dtype=jnp.float32)
    W_node = jax.random.uniform(k3, (MSG, NODE_FEAT), minval=-lim_n, maxval=lim_n, dtype=jnp.float32)
    b_node = jax.random.uniform(k4, (MSG,), minval=-lim_n, maxval=lim_n, dtype=jnp.float32)

    # Inputs in the PyTorch layout: (B, C, N)
    h_v = jax.random.normal(k5, (B, NODE_FEAT, N), dtype=jnp.float32)
    h_w = jax.random.normal(k6, (B, NODE_FEAT, N), dtype=jnp.float32)
    e_vw = jax.random.normal(k7, (B, EDGE_FEAT, N), dtype=jnp.float32)

    msg = message_function_linear(h_v, h_w, e_vw, W_edge, b_edge, W_node, b_node)
    msg = jax.block_until_ready(msg)

    # Pure-JAX reference check of the per-node loop semantics
    ref = jnp.stack(
        [e_vw[:, :, i] @ W_edge.T + b_edge + h_w[:, :, i] @ W_node.T + b_node
         for i in range(N)],
        axis=-1,
    )
    assert msg.shape == (B, MSG, N), msg.shape
    assert jnp.allclose(msg, ref, atol=1e-5, rtol=1e-5), float(jnp.max(jnp.abs(msg - ref)))

    print("KERNEL_OK")
</pallas_src>

<mosaic_0001>
module attributes {stable_mosaic.version = 11 : i64} {
  func.func @_message_linear_kernel(%arg0: i32, %arg1: i32, %arg2: memref<1x8x16xf32, #tpu.memory_space<vmem>>, %arg3: memref<1x4x16xf32, #tpu.memory_space<vmem>>, %arg4: memref<32x12xf32, #tpu.memory_space<vmem>>, %arg5: memref<32x1xf32, #tpu.memory_space<vmem>>, %arg6: memref<1x32x16xf32, #tpu.memory_space<vmem>>) attributes {dimension_semantics = [#tpu.dimension_semantics<parallel>, #tpu.dimension_semantics<parallel>], iteration_bounds = array<i64: 2, 1>, scalar_prefetch = 0 : i64, scratch_operands = 0 : i64, tpu.core_type = #tpu.core_type<tc>, window_params = [{transform_indices = @transform_0, window_bounds = array<i64: 1, 8, 16>}, {transform_indices = @transform_1, window_bounds = array<i64: 1, 4, 16>}, {pipeline_mode = #tpu.pipeline_mode<synchronous>, transform_indices = @transform_2, window_bounds = array<i64: 32, 12>}, {pipeline_mode = #tpu.pipeline_mode<synchronous>, transform_indices = @transform_3, window_bounds = array<i64: 32, 1>}, {transform_indices = @transform_4, window_bounds = array<i64: 1, 32, 16>}]} {
    %c0 = arith.constant 0 : index
    %c0_0 = arith.constant 0 : index
    %c0_1 = arith.constant 0 : index
    %0 = vector.load %arg2[%c0, %c0_0, %c0_1] : memref<1x8x16xf32, #tpu.memory_space<vmem>>, vector<1x8x16xf32>
    %1 = vector.shape_cast %0 : vector<1x8x16xf32> to vector<8x16xf32>
    %c0_2 = arith.constant 0 : index
    %c0_3 = arith.constant 0 : index
    %c0_4 = arith.constant 0 : index
    %2 = vector.load %arg3[%c0_2, %c0_3, %c0_4] : memref<1x4x16xf32, #tpu.memory_space<vmem>>, vector<1x4x16xf32>
    %3 = vector.shape_cast %2 : vector<1x4x16xf32> to vector<4x16xf32>
    %4 = tpu.concatenate %1, %3 in 0 : vector<8x16xf32>, vector<4x16xf32> -> vector<12x16xf32>
    %c0_5 = arith.constant 0 : index
    %c0_6 = arith.constant 0 : index
    %5 = vector.load %arg4[%c0_5, %c0_6] : memref<32x12xf32, #tpu.memory_space<vmem>>, vector<32x12xf32>
    %cst = arith.constant dense<0.000000e+00> : vector<32x16xf32>
    %6 = tpu.matmul %5, %4, %cst {dimension_numbers = #tpu.dot_dimension_numbers<[1], [0], [0], [1], [0, 0, 1, 1], [], []>} : vector<32x12xf32>, vector<12x16xf32>, vector<32x16xf32> -> vector<32x16xf32>
    %c0_7 = arith.constant 0 : index
    %c0_8 = arith.constant 0 : index
    %7 = vector.load %arg5[%c0_7, %c0_8] : memref<32x1xf32, #tpu.memory_space<vmem>>, vector<32x1xf32>
    %8 = vector.broadcast %7 : vector<32x1xf32> to vector<32x16xf32>
    %9 = arith.addf %6, %8 : vector<32x16xf32>
    %c0_9 = arith.constant 0 : index
    %c0_10 = arith.constant 0 : index
    %c0_11 = arith.constant 0 : index
    %10 = vector.load %arg6[%c0_9, %c0_10, %c0_11] : memref<1x32x16xf32, #tpu.memory_space<vmem>>, vector<1x32x16xf32>
    %11 = vector.shape_cast %10 : vector<1x32x16xf32> to vector<32x16xf32>
    %12 = vector.shape_cast %9 : vector<32x16xf32> to vector<1x32x16xf32>
    tpu.vector_store %arg6[%c0_9, %c0_10, %c0_11], %12 {strides = array<i32>} : memref<1x32x16xf32, #tpu.memory_space<vmem>>, vector<1x32x16xf32>,
    return
  }
  func.func @transform_0(%arg0: i32, %arg1: i32) -> (i32, i32, i32) {
    %c0_i32 = arith.constant 0 : i32
    %c0_i32_0 = arith.constant 0 : i32
    return %arg0, %c0_i32, %arg1 : i32, i32, i32
  }
  func.func @transform_1(%arg0: i32, %arg1: i32) -> (i32, i32, i32) {
    %c0_i32 = arith.constant 0 : i32
    %c0_i32_0 = arith.constant 0 : i32
    return %arg0, %c0_i32, %arg1 : i32, i32, i32
  }
  func.func @transform_2(%arg0: i32, %arg1: i32) -> (i32, i32) {
    %c0_i32 = arith.constant 0 : i32
    %c0_i32_0 = arith.constant 0 : i32
    %c0_i32_1 = arith.constant 0 : i32
    return %c0_i32, %c0_i32_0 : i32, i32
  }
  func.func @transform_3(%arg0: i32, %arg1: i32) -> (i32, i32) {
    %c0_i32 = arith.constant 0 : i32
    %c0_i32_0 = arith.constant 0 : i32
    %c0_i32_1 = arith.constant 0 : i32
    return %c0_i32, %c0_i32_0 : i32, i32
  }
  func.func @transform_4(%arg0: i32, %arg1: i32) -> (i32, i32, i32) {
    %c0_i32 = arith.constant 0 : i32
    %c0_i32_0 = arith.constant 0 : i32
    return %arg0, %c0_i32, %arg1 : i32, i32, i32
  }
}

</mosaic_0001>

<bundles_post_ra>
// kernel: tpu_custom_call.1
= control target key start
LH: loop header
LB: loop body
LE: loop exit
PB: predicated region body
PF: predicated region fallthrough
CT: control target
= control target key end

     0   :  { %s600_s15 = smov 0   ;;  %s602_s16 = smov 0   ;;  %s669_s0 = inlined_call_operand.vmem [shape: f32[2,8,16], index: 0, kind: input, shape index: {}]   ;;  %s670_s1 = inlined_call_operand.vmem [shape: f32[2,4,16], index: 1, kind: input, shape index: {}]   ;;  %s671_s2 = inlined_call_operand.vmem [shape: f32[32,12], index: 2, kind: input, shape index: {}]   ;;  %s672_s3 = inlined_call_operand.vmem [shape: f32[32,1], index: 3, kind: input, shape index: {}]   ;;  %s673_s4 = inlined_call_operand.vmem [shape: f32[2,32,16], index: 4, kind: output, shape index: {}]  }
   0x1   :  { %s604_s17 = smov 0  }
   0x2 LB: > { %s26_s18 = sadd.s32 1, %s568_s16  ;;  %p490_p0 = scmp.ge.s32.totalorder %s572_s17, 1  ;;  %s572_s17 = sphi %s604_s17, %s14_s17   ;;  %s568_s16 = sphi %s602_s16, %s675_s16   ;;  %s564_s15 = sphi %s600_s15, %s674_s15  }
   0x3   : > { %p28_p1 = scmp.ge.s32.totalorder %s26_s18, 2  ;;  %p194_p2 = scmp.lt.s32.totalorder %s572_s17, 3 }
   0x5   : > { %s677_s18 = smov (%p28_p1, %s26_s18), 0  ;;  %p195_p3 = pnand %p490_p0, %p194_p2 }
   0x6   : > { %p232_p4 = scmp.lt.s32.totalorder (!%p195_p3), %s564_s15, 1 }
   0x7   : > { %198 = sbr.rel (%p195_p3) target bundleno = 218 (0xda), region = 36 }
   0xc   : > { %v256_v0 = vld [vmem:[%s671_s2] sm:$0xff]  ;;  %vm284_vm0 = vcmask 97280   ;;  %v258_v1 = vld [vmem:[%s671_s2 + $0x10] sm:$0xff]  ;;  %s679_s15 = smov (!%p232_p4, %s564_s15), 1  ;;  %v574_v4 = vmov 0   ;;  %vm297_vm1 = vcmask 1043456  }
   0xd   : > { %513 = vmatprep.mubr.msk.f32.mxu0 %vm284_vm0, %v256_v0  ;;  %516 = vmatprep.mubr.msk.f32.mxu1 %vm284_vm0, %v258_v1  ;;  %v262_v2 = vld [vmem:[%s672_s3 + $0x10] sm:$0xff]  ;;  %v260_v3 = vld [vmem:[%s672_s3] sm:$0xff]  ;;  %s492_s27 = sshll.u32 %s679_s15, 2  ;;  %s491_s28 = sshll.u32 %s679_s15, 3  ;;  %v257_v7 = vld [vmem:[%s671_s2 + $0x8] sm:$0xff]  ;;  %vm386_vm2 = vcmask 130048  }
   0xe   : > { %549 = vset.pattern.permute.xlu1 %v574_v4  ;;  %548 = vset.pattern.permute.xlu0 %v574_v4  ;;  %s245_s5 = scalar_lea.vmem %s670_s1, %s492_s27  ;;  %s238_s8 = scalar_lea.vmem %s669_s0, %s491_s28  ;;  %v259_v8 = vld [vmem:[%s671_s2 + $0x18] sm:$0xff]  ;;  %v261_v10 = vld [vmem:[%s672_s3 + $0x8] sm:$0xff] }
   0xf   : > { %276 = vperm.xlu1 %549, %v262_v2   ;;  %266 = vperm.xlu0 %548, %v260_v3   ;;  %v255_v5 = vld [vmem:[%s245_s5] sm:$0xf]  ;;  %v263_v9 = vld [vmem:[%s672_s3 + $0x18] sm:$0xff]  ;;  %s502_s21 = sshll.u32 %s679_s15, 5 }
  0x10   : > { %v254_v6 = vld [vmem:[%s238_s8] sm:$0xff]  ;;  %509 = vmatprep.subr.msk.mxu0 %vm297_vm1, %v255_v5  ;;  %519 = vmatprep.subr.msk.mxu1 %vm297_vm1, %v255_v5  ;;  %s253_s24 = scalar_lea.vmem %s673_s4, %s502_s21 }
  0x11   : > { %510 = vmatpush3.msk.msra.mxu0 %vm297_vm1, %v255_v5  ;;  %521 = vmatpush3.msk.msra.mxu1 %vm297_vm1, %v255_v5 }
  0x12   : > { %511 = vmatprep.subr.mxu0 %v254_v6  ;;  %520 = vmatprep.subr.mxu1 %v254_v6 }
  0x13   : > { %512 = vmatpush3.msra.mxu0 %v254_v6  ;;  %522 = vmatpush3.msra.mxu1 %v254_v6 }
  0x14   : > { %514 = vmatmul.mubr.msk.f32.vlgmr.msra.gmra.mxu0 %vm284_vm0, %v257_v7  ;;  %517 = vmatmul.mubr.msk.f32.vlgmr.msra.gmra.mxu1 %vm284_vm0, %v259_v8 }
  0x15   : > { %281 = vperm.xlu1 %549, %v263_v9   ;;  %271 = vperm.xlu0 %548, %v261_v10  }
  0x8a   : > { %v277_v11 = vpop.permute.xlu1 %276  ;;  %v267_v12 = vpop.permute.xlu0 %266 }
  0x90   : > { %v282_v13 = vpop.permute.xlu1 %281  ;;  %v272_v14 = vpop.permute.xlu0 %271 }
  0xd4   : > { %v515_v15 = vpop.f32.mrf.mxu0  ;;  %v518_v16 = vpop.f32.mrf.mxu1 }
  0xd5   : > { %v373_v17 = vadd.f32 %v515_v15, %v272_v14  ;;  %v383_v18 = vadd.f32 %v518_v16, %v282_v13 }
  0xd6   : > { %v367_v19 = vpop.f32.mrf.mxu0  ;;  %v377_v20 = vpop.f32.mrf.mxu1 }
  0xd7   : > { %388 = vst.msk [vmem:[%s253_s24 + $0x8] sm:$0xff] %vm386_vm2, %v373_v17  ;;  %390 = vst.msk [vmem:[%s253_s24 + $0x18] sm:$0xff] %vm386_vm2, %v383_v18  ;;  %v368_v21 = vadd.f32 %v367_v19, %v267_v12  ;;  %v378_v22 = vadd.f32 %v377_v20, %v277_v11 }
  0xd9   : > { %387 = vst.msk [vmem:[%s253_s24] sm:$0xff] %vm386_vm2, %v368_v21  ;;  %389 = vst.msk [vmem:[%s253_s24 + $0x10] sm:$0xff] %vm386_vm2, %v378_v22 }
  0xda PF: > { %s14_s17 = sadd.s32 1, %s572_s17   ;;  %s674_s15 = smov %s568_s16 }
  0xdb   : > { %p11_p5 = scmp.ge.s32.totalorder %s14_s17, 4   ;;  %s675_s16 = smov %s677_s18 }
  0xdd   :  { %13 = sbr.rel (!%p11_p5) target bundleno = 2 (0x2), region = 69 }

</bundles_post_ra>
